<compile_context>
chip_gen: v7x
topology: tpu7x:2x2x1
jax: 0.10.0
libtpu: 0.0.40
codegen_flags: <defaults>
</compile_context>

<pallas_src>
import functools

import jax
import jax.numpy as jnp
from jax.experimental import pallas as pl
from jax.experimental.pallas import tpu as pltpu


EPS = 1e-6
# Used only in the rare Msp % 128 != 0 fallback pad: tanh(0.5 * -80) == -1.0
# exactly in f32, so sigmoid == 0 exactly and padded lanes contribute nothing.
_PAD_LOGIT = -80.0


def _round_up(x, m):
    return ((x + m - 1) // m) * m


def _dice_partial_kernel(x_ref, lab_ref, inter_ref, psum_ref, tsum_ref, *,
                         valid_rows, rows_per_block, blocks_per_split,
                         needs_mask):
    # Grid = (split, batch, chunk).  Outputs are indexed only by `split`, so the
    # three (C, 1) accumulator blocks stay VMEM-resident across (batch, chunk).
    s = pl.program_id(0)
    n = pl.program_id(1)          # batch axis          (reduction)
    k = pl.program_id(2)          # spatial-chunk axis  (reduction)

    @pl.when(jnp.logical_and(n == 0, k == 0))
    def _():
        inter_ref[...] = jnp.zeros_like(inter_ref)
        psum_ref[...] = jnp.zeros_like(psum_ref)
        tsum_ref[...] = jnp.zeros_like(tsum_ref)

    x = x_ref[...].astype(jnp.float32)       # (C, TR, 128) logits, cast in-kernel
    lab = lab_ref[...].astype(jnp.int32)     # (1, TR, 128) labels, cast in-kernel

    # sigmoid via a single EUP op: sigmoid(x) = 0.5 * tanh(0.5 * x) + 0.5
    p = 0.5 * jnp.tanh(0.5 * x) + 0.5

    # One-hot by select: mask[c, r, l] = (labels[r, l] == c)
    ch = jax.lax.broadcasted_iota(jnp.int32, x.shape, 0)
    m = lab == ch                            # (1,TR,128) vs (C,TR,128) broadcast

    if needs_mask:
        # Row tail of the final chunk (static threshold; replaces XLA-side pad).
        row0 = (s * blocks_per_split + k) * rows_per_block
        rows = jax.lax.broadcasted_iota(jnp.int32, lab.shape, 1) + row0
        valid = rows < valid_rows            # (1, TR, 128)
        m = jnp.logical_and(m, valid)
        pp = jnp.where(valid, p * p, 0.0)
    else:
        pp = p * p

    pt = jnp.where(m, p, 0.0)                # p * onehot without the multiply
    t = m.astype(jnp.float32)                # onehot target (t*t == t)

    inter_ref[...] += jnp.sum(jnp.sum(pt, axis=-1), axis=-1, keepdims=True)
    psum_ref[...] += jnp.sum(jnp.sum(pp, axis=-1), axis=-1, keepdims=True)
    tsum_ref[...] += jnp.sum(jnp.sum(t, axis=-1), axis=-1, keepdims=True)


@functools.partial(jax.jit, static_argnames=("classes", "tile_rows", "num_splits"))
def dice_loss(logits, labels, classes=4, tile_rows=1024, num_splits=1):
    """Forward pass of DiceLoss (sigmoid norm, weight=None, eval_regions=False).

    logits: (N, C, D, H, W) float (f32 / bf16 — streamed in native dtype)
    labels: (N, D, H, W)    int   (values in [0, classes); native int dtype)
    returns: (loss, mean_dice, per_channel_dice[1:])
    """
    # TODO(synk): softmax normalization, per-class `weight`, and
    # eval_regions=True region remapping are not implemented (module defaults).
    N, C, D, H, W = logits.shape
    assert C == classes
    Msp = D * H * W

    lab = labels
    if not jnp.issubdtype(lab.dtype, jnp.integer):
        lab = lab.astype(jnp.int32)

    x_flat = logits.reshape(N, C, Msp)           # free reshape, no transpose
    lab_flat = lab.reshape(N, 1, Msp)
    Ml = Msp
    if Msp % 128 != 0:
        # TODO(synk): rare unaligned-volume fallback still pays one XLA pad pass;
        # a flat-layout tail kernel would remove it.
        pad = 128 - Msp % 128
        Ml = Msp + pad
        x_flat = jnp.pad(x_flat, ((0, 0), (0, 0), (0, pad)),
                         constant_values=_PAD_LOGIT)
        lab_flat = jnp.pad(lab_flat, ((0, 0), (0, 0), (0, pad)),
                           constant_values=-1)

    R = Ml // 128
    x = x_flat.reshape(N, C, R, 128)             # free reshape -> dense vreg planes
    labr = lab_flat.reshape(N, 1, R, 128)

    tile_rows = max(32, tile_rows)
    S = max(1, num_splits)
    if S > 1 and R < 64 * S:                     # too small to shard across cores
        S = 1

    if S == 1 and R <= tile_rows:
        TR, K = R, 1                             # full-extent rows: no (8,128) rule
    else:
        TR = min(tile_rows, pl.cdiv(R, S))
        TR = max(32, (TR // 32) * 32)            # mult. of 32: f32/bf16/int8 safe
        K = pl.cdiv(R, S * TR)
    needs_mask = (S * K * TR != R)

    kernel = functools.partial(
        _dice_partial_kernel,
        valid_rows=R, rows_per_block=TR, blocks_per_split=K,
        needs_mask=needs_mask)

    grid = (S, N, K)
    x_spec = pl.BlockSpec((None, C, TR, 128),
                          lambda s, n, k: (n, 0, s * K + k, 0))
    lab_spec = pl.BlockSpec((None, 1, TR, 128),
                            lambda s, n, k: (n, 0, s * K + k, 0))
    acc_spec = pl.BlockSpec((None, C, 1), lambda s, n, k: (s, 0, 0))
    partial_shape = jax.ShapeDtypeStruct((S, C, 1), jnp.float32)

    inter_p, psum_p, tsum_p = pl.pallas_call(
        kernel,
        out_shape=(partial_shape, partial_shape, partial_shape),
        grid_spec=pltpu.PrefetchScalarGridSpec(
            num_scalar_prefetch=0,
            grid=grid,
            in_specs=[x_spec, lab_spec],
            out_specs=[acc_spec, acc_spec, acc_spec],
        ),
        compiler_params=pltpu.CompilerParams(
            # Leading split axis shards across TensorCores on multi-TC parts
            # (set num_splits=2 on v7x; pltpu.CORE_PARALLEL is an alternative);
            # batch & chunk axes are reductions into VMEM-resident accumulators.
            dimension_semantics=("parallel", "arbitrary", "arbitrary"),
        ),
    )(x, labr)

    # Tiny epilogue in plain JAX: combine per-split partials, then the division.
    intersect = inter_p[:, :, 0].sum(axis=0)                           # (C,)
    union = psum_p[:, :, 0].sum(axis=0) + tsum_p[:, :, 0].sum(axis=0)  # (C,)
    per_channel_dice = 2.0 * intersect / jnp.maximum(union, EPS)
    mean = jnp.mean(per_channel_dice)
    loss = 1.0 - mean
    return loss, mean, per_channel_dice[1:]


def _reference(logits, labels, classes=4):
    """Pure-JAX reference matching the PyTorch module semantics."""
    N, C, D, H, W = logits.shape
    onehot = jax.nn.one_hot(labels, classes, axis=1, dtype=jnp.float32)
    p = jax.nn.sigmoid(logits.astype(jnp.float32))
    pf = jnp.transpose(p, (1, 0, 2, 3, 4)).reshape(C, -1)
    tf = jnp.transpose(onehot, (1, 0, 2, 3, 4)).reshape(C, -1)
    intersect = jnp.sum(pf * tf, axis=-1)
    union = jnp.sum(pf * pf, axis=-1) + jnp.sum(tf * tf, axis=-1)
    dice = 2.0 * intersect / jnp.maximum(union, EPS)
    mean = jnp.mean(dice)
    return 1.0 - mean, mean, dice[1:]


if __name__ == "__main__":
    key = jax.random.PRNGKey(0)
    k1, k2 = jax.random.split(key)

    N, C, D, H, W = 2, 4, 8, 16, 16          # small (N, C, D, H, W) volume
    logits = jax.random.normal(k1, (N, C, D, H, W), dtype=jnp.float32)
    labels = jax.random.randint(k2, (N, D, H, W), 0, C, dtype=jnp.int32)

    # f32 path
    loss, mean, tail = dice_loss(logits, labels, classes=C)
    jax.block_until_ready((loss, mean, tail))
    ref_loss, ref_mean, ref_tail = _reference(logits, labels, classes=C)
    assert jnp.allclose(loss, ref_loss, atol=2e-4, rtol=2e-4)
    assert jnp.allclose(mean, ref_mean, atol=2e-4, rtol=2e-4)
    assert jnp.allclose(tail, ref_tail, atol=2e-4, rtol=2e-4)

    # bf16 path: native dtype streamed from HBM, cast to f32 inside the kernel.
    logits_bf16 = logits.astype(jnp.bfloat16)
    loss16, mean16, tail16 = dice_loss(logits_bf16, labels, classes=C)
    jax.block_until_ready((loss16, mean16, tail16))
    r_loss16, r_mean16, r_tail16 = _reference(logits_bf16, labels, classes=C)
    assert jnp.allclose(loss16, r_loss16, atol=2e-4, rtol=2e-4)
    assert jnp.allclose(mean16, r_mean16, atol=2e-4, rtol=2e-4)
    assert jnp.allclose(tail16, r_tail16, atol=2e-4, rtol=2e-4)

    print("KERNEL_OK")
</pallas_src>

<mosaic_0001>
module attributes {stable_mosaic.version = 11 : i64} {
  func.func @_dice_partial_kernel(%arg0: i32, %arg1: i32, %arg2: i32, %arg3: memref<1x4x16x128xf32, #tpu.memory_space<vmem>>, %arg4: memref<1x1x16x128xi32, #tpu.memory_space<vmem>>, %arg5: memref<1x4x1xf32, #tpu.memory_space<vmem>>, %arg6: memref<1x4x1xf32, #tpu.memory_space<vmem>>, %arg7: memref<1x4x1xf32, #tpu.memory_space<vmem>>) attributes {dimension_semantics = [#tpu.dimension_semantics<parallel>, #tpu.dimension_semantics<arbitrary>, #tpu.dimension_semantics<arbitrary>], iteration_bounds = array<i64: 1, 2, 1>, scalar_prefetch = 0 : i64, scratch_operands = 0 : i64, tpu.core_type = #tpu.core_type<tc>, window_params = [{transform_indices = @transform_0, window_bounds = array<i64: 1, 4, 16, 128>}, {transform_indices = @transform_1, window_bounds = array<i64: 1, 1, 16, 128>}, {transform_indices = @transform_2, window_bounds = array<i64: 1, 4, 1>}, {transform_indices = @transform_3, window_bounds = array<i64: 1, 4, 1>}, {transform_indices = @transform_4, window_bounds = array<i64: 1, 4, 1>}]} {
    %c0_i32 = arith.constant 0 : i32
    %0 = arith.cmpi eq, %arg1, %c0_i32 : i32
    %c0_i32_0 = arith.constant 0 : i32
    %1 = arith.cmpi eq, %arg2, %c0_i32_0 : i32
    %2 = arith.andi %0, %1 : i1
    %3 = arith.extui %2 : i1 to i32
    %c0_i32_1 = arith.constant 0 : i32
    %4 = arith.cmpi ne, %3, %c0_i32_1 : i32
    scf.if %4 {
      %cst_36 = arith.constant 0.000000e+00 : f32
      %51 = vector.broadcast %cst_36 : f32 to vector<4x1xf32>
      %c0_37 = arith.constant 0 : index
      %c0_38 = arith.constant 0 : index
      %c0_39 = arith.constant 0 : index
      %52 = vector.load %arg5[%c0_37, %c0_38, %c0_39] : memref<1x4x1xf32, #tpu.memory_space<vmem>>, vector<1x4x1xf32>
      %53 = vector.shape_cast %52 : vector<1x4x1xf32> to vector<4x1xf32>
      %54 = vector.shape_cast %51 : vector<4x1xf32> to vector<1x4x1xf32>
      tpu.vector_store %arg5[%c0_37, %c0_38, %c0_39], %54 {strides = array<i32>} : memref<1x4x1xf32, #tpu.memory_space<vmem>>, vector<1x4x1xf32>,
      %cst_40 = arith.constant 0.000000e+00 : f32
      %55 = vector.broadcast %cst_40 : f32 to vector<4x1xf32>
      %c0_41 = arith.constant 0 : index
      %c0_42 = arith.constant 0 : index
      %c0_43 = arith.constant 0 : index
      %56 = vector.load %arg6[%c0_41, %c0_42, %c0_43] : memref<1x4x1xf32, #tpu.memory_space<vmem>>, vector<1x4x1xf32>
      %57 = vector.shape_cast %56 : vector<1x4x1xf32> to vector<4x1xf32>
      %58 = vector.shape_cast %55 : vector<4x1xf32> to vector<1x4x1xf32>
      tpu.vector_store %arg6[%c0_41, %c0_42, %c0_43], %58 {strides = array<i32>} : memref<1x4x1xf32, #tpu.memory_space<vmem>>, vector<1x4x1xf32>,
      %cst_44 = arith.constant 0.000000e+00 : f32
      %59 = vector.broadcast %cst_44 : f32 to vector<4x1xf32>
      %c0_45 = arith.constant 0 : index
      %c0_46 = arith.constant 0 : index
      %c0_47 = arith.constant 0 : index
      %60 = vector.load %arg7[%c0_45, %c0_46, %c0_47] : memref<1x4x1xf32, #tpu.memory_space<vmem>>, vector<1x4x1xf32>
      %61 = vector.shape_cast %60 : vector<1x4x1xf32> to vector<4x1xf32>
      %62 = vector.shape_cast %59 : vector<4x1xf32> to vector<1x4x1xf32>
      tpu.vector_store %arg7[%c0_45, %c0_46, %c0_47], %62 {strides = array<i32>} : memref<1x4x1xf32, #tpu.memory_space<vmem>>, vector<1x4x1xf32>,
    } else {
    }
    %c0 = arith.constant 0 : index
    %c0_2 = arith.constant 0 : index
    %c0_3 = arith.constant 0 : index
    %c0_4 = arith.constant 0 : index
    %5 = vector.load %arg3[%c0, %c0_2, %c0_3, %c0_4] : memref<1x4x16x128xf32, #tpu.memory_space<vmem>>, vector<1x4x16x128xf32>
    %6 = vector.shape_cast %5 : vector<1x4x16x128xf32> to vector<4x16x128xf32>
    %c0_5 = arith.constant 0 : index
    %c0_6 = arith.constant 0 : index
    %c0_7 = arith.constant 0 : index
    %c0_8 = arith.constant 0 : index
    %7 = vector.load %arg4[%c0_5, %c0_6, %c0_7, %c0_8] : memref<1x1x16x128xi32, #tpu.memory_space<vmem>>, vector<1x1x16x128xi32>
    %8 = vector.shape_cast %7 : vector<1x1x16x128xi32> to vector<1x16x128xi32>
    %cst = arith.constant 5.000000e-01 : f32
    %9 = vector.broadcast %cst : f32 to vector<4x16x128xf32>
    %10 = arith.mulf %9, %6 : vector<4x16x128xf32>
    %11 = math.tanh %10 : vector<4x16x128xf32>
    %cst_9 = arith.constant 5.000000e-01 : f32
    %12 = vector.broadcast %cst_9 : f32 to vector<4x16x128xf32>
    %13 = arith.mulf %12, %11 : vector<4x16x128xf32>
    %cst_10 = arith.constant 5.000000e-01 : f32
    %14 = vector.broadcast %cst_10 : f32 to vector<4x16x128xf32>
    %15 = arith.addf %13, %14 : vector<4x16x128xf32>
    %16 = tpu.iota {dimensions = array<i32: 0>} : vector<4x16x128xi32>
    %17 = vector.broadcast %8 : vector<1x16x128xi32> to vector<4x16x128xi32>
    %18 = arith.cmpi eq, %17, %16 : vector<4x16x128xi32>
    %19 = arith.mulf %15, %15 : vector<4x16x128xf32>
    %cst_11 = arith.constant 0.000000e+00 : f32
    %20 = vector.broadcast %cst_11 : f32 to vector<4x16x128xf32>
    %21 = arith.select %18, %15, %20 : vector<4x16x128xi1>, vector<4x16x128xf32>
    %22 = arith.extui %18 : vector<4x16x128xi1> to vector<4x16x128xi32>
    %23 = arith.sitofp %22 : vector<4x16x128xi32> to vector<4x16x128xf32>
    %c0_12 = arith.constant 0 : index
    %c0_13 = arith.constant 0 : index
    %c0_14 = arith.constant 0 : index
    %24 = vector.load %arg5[%c0_12, %c0_13, %c0_14] : memref<1x4x1xf32, #tpu.memory_space<vmem>>, vector<1x4x1xf32>
    %25 = vector.shape_cast %24 : vector<1x4x1xf32> to vector<4x1xf32>
    %cst_15 = arith.constant dense<0.000000e+00> : vector<4x16xf32>
    %26 = vector.multi_reduction <add>, %21, %cst_15 [2] : vector<4x16x128xf32> to vector<4x16xf32>
    %cst_16 = arith.constant dense<0.000000e+00> : vector<4xf32>
    %27 = vector.multi_reduction <add>, %26, %cst_16 [1] : vector<4x16xf32> to vector<4xf32>
    %28 = vector.shape_cast %27 : vector<4xf32> to vector<4x1xf32>
    %29 = arith.addf %25, %28 : vector<4x1xf32>
    %c0_17 = arith.constant 0 : index
    %c0_18 = arith.constant 0 : index
    %c0_19 = arith.constant 0 : index
    %30 = vector.load %arg5[%c0_17, %c0_18, %c0_19] : memref<1x4x1xf32, #tpu.memory_space<vmem>>, vector<1x4x1xf32>
    %31 = vector.shape_cast %30 : vector<1x4x1xf32> to vector<4x1xf32>
    %32 = vector.shape_cast %29 : vector<4x1xf32> to vector<1x4x1xf32>
    tpu.vector_store %arg5[%c0_17, %c0_18, %c0_19], %32 {strides = array<i32>} : memref<1x4x1xf32, #tpu.memory_space<vmem>>, vector<1x4x1xf32>,
    %c0_20 = arith.constant 0 : index
    %c0_21 = arith.constant 0 : index
    %c0_22 = arith.constant 0 : index
    %33 = vector.load %arg6[%c0_20, %c0_21, %c0_22] : memref<1x4x1xf32, #tpu.memory_space<vmem>>, vector<1x4x1xf32>
    %34 = vector.shape_cast %33 : vector<1x4x1xf32> to vector<4x1xf32>
    %cst_23 = arith.constant dense<0.000000e+00> : vector<4x16xf32>
    %35 = vector.multi_reduction <add>, %19, %cst_23 [2] : vector<4x16x128xf32> to vector<4x16xf32>
    %cst_24 = arith.constant dense<0.000000e+00> : vector<4xf32>
    %36 = vector.multi_reduction <add>, %35, %cst_24 [1] : vector<4x16xf32> to vector<4xf32>
    %37 = vector.shape_cast %36 : vector<4xf32> to vector<4x1xf32>
    %38 = arith.addf %34, %37 : vector<4x1xf32>
    %c0_25 = arith.constant 0 : index
    %c0_26 = arith.constant 0 : index
    %c0_27 = arith.constant 0 : index
    %39 = vector.load %arg6[%c0_25, %c0_26, %c0_27] : memref<1x4x1xf32, #tpu.memory_space<vmem>>, vector<1x4x1xf32>
    %40 = vector.shape_cast %39 : vector<1x4x1xf32> to vector<4x1xf32>
    %41 = vector.shape_cast %38 : vector<4x1xf32> to vector<1x4x1xf32>
    tpu.vector_store %arg6[%c0_25, %c0_26, %c0_27], %41 {strides = array<i32>} : memref<1x4x1xf32, #tpu.memory_space<vmem>>, vector<1x4x1xf32>,
    %c0_28 = arith.constant 0 : index
    %c0_29 = arith.constant 0 : index
    %c0_30 = arith.constant 0 : index
    %42 = vector.load %arg7[%c0_28, %c0_29, %c0_30] : memref<1x4x1xf32, #tpu.memory_space<vmem>>, vector<1x4x1xf32>
    %43 = vector.shape_cast %42 : vector<1x4x1xf32> to vector<4x1xf32>
    %cst_31 = arith.constant dense<0.000000e+00> : vector<4x16xf32>
    %44 = vector.multi_reduction <add>, %23, %cst_31 [2] : vector<4x16x128xf32> to vector<4x16xf32>
    %cst_32 = arith.constant dense<0.000000e+00> : vector<4xf32>
    %45 = vector.multi_reduction <add>, %44, %cst_32 [1] : vector<4x16xf32> to vector<4xf32>
    %46 = vector.shape_cast %45 : vector<4xf32> to vector<4x1xf32>
    %47 = arith.addf %43, %46 : vector<4x1xf32>
    %c0_33 = arith.constant 0 : index
    %c0_34 = arith.constant 0 : index
    %c0_35 = arith.constant 0 : index
    %48 = vector.load %arg7[%c0_33, %c0_34, %c0_35] : memref<1x4x1xf32, #tpu.memory_space<vmem>>, vector<1x4x1xf32>
    %49 = vector.shape_cast %48 : vector<1x4x1xf32> to vector<4x1xf32>
    %50 = vector.shape_cast %47 : vector<4x1xf32> to vector<1x4x1xf32>
    tpu.vector_store %arg7[%c0_33, %c0_34, %c0_35], %50 {strides = array<i32>} : memref<1x4x1xf32, #tpu.memory_space<vmem>>, vector<1x4x1xf32>,
    return
  }
  func.func @transform_0(%arg0: i32, %arg1: i32, %arg2: i32) -> (i32, i32, i32, i32) {
    %c1_i32 = arith.constant 1 : i32
    %0 = arith.muli %arg0, %c1_i32 : i32
    %1 = arith.addi %0, %arg2 : i32
    %c0_i32 = arith.constant 0 : i32
    %c0_i32_0 = arith.constant 0 : i32
    %c0_i32_1 = arith.constant 0 : i32
    return %arg1, %c0_i32, %1, %c0_i32_0 : i32, i32, i32, i32
  }
  func.func @transform_1(%arg0: i32, %arg1: i32, %arg2: i32) -> (i32, i32, i32, i32) {
    %c1_i32 = arith.constant 1 : i32
    %0 = arith.muli %arg0, %c1_i32 : i32
    %1 = arith.addi %0, %arg2 : i32
    %c0_i32 = arith.constant 0 : i32
    %c0_i32_0 = arith.constant 0 : i32
    %c0_i32_1 = arith.constant 0 : i32
    return %arg1, %c0_i32, %1, %c0_i32_0 : i32, i32, i32, i32
  }
  func.func @transform_2(%arg0: i32, %arg1: i32, %arg2: i32) -> (i32, i32, i32) {
    %c0_i32 = arith.constant 0 : i32
    %c0_i32_0 = arith.constant 0 : i32
    %c0_i32_1 = arith.constant 0 : i32
    return %arg0, %c0_i32, %c0_i32_0 : i32, i32, i32
  }
  func.func @transform_3(%arg0: i32, %arg1: i32, %arg2: i32) -> (i32, i32, i32) {
    %c0_i32 = arith.constant 0 : i32
    %c0_i32_0 = arith.constant 0 : i32
    %c0_i32_1 = arith.constant 0 : i32
    return %arg0, %c0_i32, %c0_i32_0 : i32, i32, i32
  }
  func.func @transform_4(%arg0: i32, %arg1: i32, %arg2: i32) -> (i32, i32, i32) {
    %c0_i32 = arith.constant 0 : i32
    %c0_i32_0 = arith.constant 0 : i32
    %c0_i32_1 = arith.constant 0 : i32
    return %arg0, %c0_i32, %c0_i32_0 : i32, i32, i32
  }
}

</mosaic_0001>

<bundles_post_ra>
// kernel: dice_loss.1
= control target key start
LH: loop header
LB: loop body
LE: loop exit
PB: predicated region body
PF: predicated region fallthrough
CT: control target
= control target key end

     0   :  { %s873_s15 = smov 0   ;;  %s875_s16 = smov 0   ;;  %s1037_s0 = inlined_call_operand.vmem [shape: f32[2,4,16,128], index: 0, kind: input, shape index: {}]   ;;  %s1038_s1 = inlined_call_operand.vmem [shape: s32[2,1,16,128], index: 1, kind: input, shape index: {}]   ;;  %s1039_s2 = inlined_call_operand.vmem [shape: f32[1,4,1], index: 2, kind: output, shape index: {0}]   ;;  %s1040_s3 = inlined_call_operand.vmem [shape: f32[1,4,1], index: 3, kind: output, shape index: {1}]   ;;  %s1041_s4 = inlined_call_operand.vmem [shape: f32[1,4,1], index: 4, kind: output, shape index: {2}]  }
   0x1   :  { %s877_s17 = smov 0  }
   0x2 LB: > { %s30_s18 = sadd.s32 1, %s840_s16  ;;  %p758_p0 = scmp.ge.s32.totalorder %s844_s17, 1  ;;  %s844_s17 = sphi %s877_s17, %s15_s17   ;;  %s840_s16 = sphi %s875_s16, %s1043_s16   ;;  %s836_s15 = sphi %s873_s15, %s1042_s15  }
   0x3   : > { %p32_p1 = scmp.ge.s32.totalorder %s30_s18, 2  ;;  %p218_p2 = scmp.lt.s32.totalorder %s844_s17, 3 }
   0x5   : > { %s1045_s18 = smov (%p32_p1, %s30_s18), 0  ;;  %p219_p3 = pnand %p758_p0, %p218_p2 }
   0x6   : > { %p268_p4 = scmp.lt.s32.totalorder (!%p219_p3), %s836_s15, 1  ;;  %p302_p5 = scmp.eq.s32.totalorder (!%p219_p3), %s836_s15, 0 }
   0x7   : > { %222 = sbr.rel (%p219_p3) target bundleno = 370 (0x172), region = 28 }
   0xe   : > { %s1047_s15 = smov (!%p268_p4, %s836_s15), 1  ;;  %307 = sbr.rel (!%p302_p5) target bundleno = 21 (0x15), region = 32 }
   0xf   : > { %s777_s19 = sshll.u32 %s1047_s15, 6  ;;  %s778_s20 = sshll.u32 %s1047_s15, 4  ;;  %vm308_vm0 = vcmask (%p302_p5), 3072   ;;  %v846_v0 = vmov (%p302_p5), 0.0  }
  0x10   : > { %s894_s23 = scalar_lea.vmem %s1037_s0, %s777_s19  ;;  %s287_s26 = scalar_lea.vmem %s1038_s1, %s778_s20  ;;  %309 = vst.msk [vmem:[%s1039_s2] sm:$0xf] (%p302_p5), %vm308_vm0, %v846_v0  ;;  %310 = vst.msk [vmem:[%s1040_s3] sm:$0xf] (%p302_p5), %vm308_vm0, %v846_v0 }
  0x11   : > { %311 = vst.msk [vmem:[%s1041_s4] sm:$0xf] (%p302_p5), %vm308_vm0, %v846_v0 }
  0x15 PF: > { %v908_v1 = vld [vmem:[%s287_s26 + $0x8] sm:$0xff]  ;;  %v910_v2 = vld [vmem:[%s287_s26] sm:$0xff]  ;;  %v314_v3 = vld [vmem:[%s894_s23 + $0x10] sm:$0xff]  ;;  %v847_v6 = vmov 0.0   ;;  %vm430_vm9 = vcmask 130112   ;;  %vm459_vm10 = vcmask 1041409  }
  0x16   : > { %vm355_vm1 = vcmp.eq.s32.totalorder %v908_v1, 0  ;;  %vm354_vm2 = vcmp.eq.s32.totalorder %v910_v2, 0  ;;  %vm357_vm3 = vcmp.eq.s32.totalorder %v908_v1, 1  ;;  %vm356_vm4 = vcmp.eq.s32.totalorder %v910_v2, 1  ;;  %v312_v4 = vld [vmem:[%s894_s23] sm:$0xff]  ;;  %v315_v5 = vld [vmem:[%s894_s23 + $0x18] sm:$0xff] }
  0x17   : > { %v765_v7 = vsel %vm355_vm1, 1.0, %v847_v6  ;;  %v764_v8 = vsel %vm354_vm2, 1.0, %v847_v6  ;;  %v313_v9 = vld [vmem:[%s894_s23 + $0x8] sm:$0xff]  ;;  %v324_v10 = vmul.f32 0.5, %v314_v3  ;;  %v322_v11 = vmul.f32 0.5, %v312_v4  ;;  %v316_v17 = vld [vmem:[%s894_s23 + $0x20] sm:$0xff] }
  0x18   : > { %546 = vadd.xlane.f32.xlu1 %v765_v7  ;;  %544 = vadd.xlane.f32.xlu0 %v764_v8  ;;  %v325_v12 = vmul.f32 0.5, %v315_v5  ;;  %v767_v13 = vsel %vm357_vm3, 1.0, %v847_v6  ;;  %v766_v14 = vsel %vm356_vm4, 1.0, %v847_v6  ;;  %v323_v15 = vmul.f32 0.5, %v313_v9  ;;  %v317_v16 = vld [vmem:[%s894_s23 + $0x28] sm:$0xff]  ;;  %v319_v28 = vld [vmem:[%s894_s23 + $0x38] sm:$0xff] }
  0x19   : > { %806 = vtanh.f32 %v324_v10  ;;  %v327_v18 = vmul.f32 0.5, %v317_v16  ;;  %v326_v19 = vmul.f32 0.5, %v316_v17  ;;  %v318_v31 = vld [vmem:[%s894_s23 + $0x30] sm:$0xff]  ;;  %v329_v36 = vmul.f32 0.5, %v319_v28 }
  0x1a   : > { %808 = vtanh.f32 %v322_v11  ;;  %v328_v38 = vmul.f32 0.5, %v318_v31  ;;  %vm359_vm5 = vcmp.eq.s32.totalorder %v908_v1, 2  ;;  %vm358_vm6 = vcmp.eq.s32.totalorder %v910_v2, 2 }
  0x1b   : > { %810 = vtanh.f32 %v325_v12  ;;  %v769_v58 = vsel %vm359_vm5, 1.0, %v847_v6  ;;  %v768_v60 = vsel %vm358_vm6, 1.0, %v847_v6  ;;  %vm361_vm7 = vcmp.eq.s32.totalorder %v908_v1, 3 }
  0x1c   : > { %550 = vadd.xlane.f32.xlu1 %v767_v13  ;;  %548 = vadd.xlane.f32.xlu0 %v766_v14  ;;  %812 = vtanh.f32 %v323_v15  ;;  %vm360_vm8 = vcmp.eq.s32.totalorder %v910_v2, 3  ;;  %v771_v4 = vsel %vm361_vm7, 1.0, %v847_v6  ;;  %v419_v14 = vlaneseq }
  0x1d   : > { %814 = vtanh.f32 %v327_v18  ;;  %v770_v5 = vsel %vm360_vm8, 1.0, %v847_v6  ;;  %vm461_vm11 = vcmask 1042434   ;;  %vm463_vm12 = vcmask 1043459  }
  0x1e   : > { %816 = vtanh.f32 %v326_v19  ;;  %v420_v17 = vand.u32 127, %v419_v14  ;;  %v422_v19 = vshrl.u32 %v419_v14, 7  ;;  %vm466_vm13 = vcmask 125952  }
  0x1f   : > { %818 = vtanh.f32 %v329_v36  ;;  %vm471_vm14 = vcmask 3072  }
  0x20   : > { %820 = vtanh.f32 %v328_v38 }
  0x23   : > { %v807_v20 = vpop.eup %806 }
  0x24   : > { %v809_v21 = vpop.eup %808  ;;  %v340_v22 = vmul.f32 0.5, %v807_v20  ;;  %v425_v20 = vadd.s32 4294967288, %v420_v17 }
  0x25   : > { %v811_v23 = vpop.eup %810  ;;  %v338_v24 = vmul.f32 0.5, %v809_v21 }
  0x26   : > { %v813_v25 = vpop.eup %812  ;;  %v348_v26 = vadd.f32 0.5, %v340_v22  ;;  %v341_v27 = vmul.f32 0.5, %v811_v23  ;;  %v968_v23 = vsub.s32 %v425_v20, %v422_v19 }
  0x27   : > { %v346_v29 = vadd.f32 0.5, %v338_v24  ;;  %v339_v30 = vmul.f32 0.5, %v813_v25  ;;  %v815_v39 = vpop.eup %814  ;;  %v423_v25 = vsub.s32 %v420_v17, %v422_v19 }
  0x28   : > { %v372_v32 = vsel %vm356_vm4, %v348_v26, 0.0  ;;  %v349_v33 = vadd.f32 0.5, %v341_v27  ;;  %v817_v41 = vpop.eup %816  ;;  %v343_v44 = vmul.f32 0.5, %v815_v39  ;;  %v364_v47 = vmul.f32 %v348_v26, %v348_v26 }
  0x29   : > { %399 = vadd.xlane.f32.xlu1 %v372_v32  ;;  %v370_v34 = vsel %vm354_vm2, %v346_v29, 0.0  ;;  %v347_v35 = vadd.f32 0.5, %v339_v30  ;;  %v362_v43 = vmul.f32 %v346_v29, %v346_v29  ;;  %v342_v45 = vmul.f32 0.5, %v817_v41  ;;  %v819_v51 = vpop.eup %818 }
  0x2a   : > { %395 = vadd.xlane.f32.xlu0 %v370_v34  ;;  %v373_v37 = vsel %vm357_vm3, %v349_v33, 0.0  ;;  %v365_v46 = vmul.f32 %v349_v33, %v349_v33  ;;  %v351_v48 = vadd.f32 0.5, %v343_v44  ;;  %v821_v53 = vpop.eup %820  ;;  %v345_v56 = vmul.f32 0.5, %v819_v51 }
  0x2b   : > { %v371_v40 = vsel %vm355_vm1, %v347_v35, 0.0  ;;  %v363_v42 = vmul.f32 %v347_v35, %v347_v35  ;;  %v350_v49 = vadd.f32 0.5, %v342_v45  ;;  %v344_v57 = vmul.f32 0.5, %v821_v53 }
  0x2c   : > { %v375_v50 = vsel %vm359_vm5, %v351_v48, 0.0  ;;  %v367_v54 = vmul.f32 %v351_v48, %v351_v48  ;;  %v353_v59 = vadd.f32 0.5, %v345_v56 }
  0x2d   : > { %401 = vadd.xlane.f32.xlu1 %v373_v37  ;;  %v374_v52 = vsel %vm358_vm6, %v350_v49, 0.0  ;;  %v366_v55 = vmul.f32 %v350_v49, %v350_v49  ;;  %v352_v61 = vadd.f32 0.5, %v344_v57 }
  0x2e   : > { %397 = vadd.xlane.f32.xlu0 %v371_v40  ;;  %v377_v62 = vsel %vm361_vm7, %v353_v59, 0.0  ;;  %v369_v0 = vmul.f32 %v353_v59, %v353_v59 }
  0x2f   : > { %v376_v63 = vsel %vm360_vm8, %v352_v61, 0.0  ;;  %v368_v3 = vmul.f32 %v352_v61, %v352_v61 }
  0x31   : > { %476 = vadd.xlane.f32.xlu1 %v363_v42 }
  0x32   : > { %474 = vadd.xlane.f32.xlu0 %v362_v43 }
  0x35   : > { %480 = vadd.xlane.f32.xlu1 %v365_v46 }
  0x36   : > { %478 = vadd.xlane.f32.xlu0 %v364_v47 }
  0x39   : > { %405 = vadd.xlane.f32.xlu1 %v375_v50 }
  0x3a   : > { %403 = vadd.xlane.f32.xlu0 %v374_v52 }
  0x3d   : > { %484 = vadd.xlane.f32.xlu1 %v367_v54 }
  0x3e   : > { %482 = vadd.xlane.f32.xlu0 %v366_v55 }
  0x41   : > { %554 = vadd.xlane.f32.xlu1 %v769_v58 }
  0x42   : > { %552 = vadd.xlane.f32.xlu0 %v768_v60 }
  0x45   : > { %409 = vadd.xlane.f32.xlu1 %v377_v62 }
  0x46   : > { %407 = vadd.xlane.f32.xlu0 %v376_v63 }
  0x49   : > { %488 = vadd.xlane.f32.xlu1 %v369_v0 }
  0x4a   : > { %486 = vadd.xlane.f32.xlu0 %v368_v3 }
  0x4d   : > { %558 = vadd.xlane.f32.xlu1 %v771_v4 }
  0x4e   : > { %556 = vadd.xlane.f32.xlu0 %v770_v5 }
  0xa5   : > { %v960_v1 = vpop.xlane.xlu1 %546  ;;  %v962_v7 = vpop.xlane.xlu0 %544 }
  0xa6   : > { %v575_v44 = vrot.slane %v960_v1, %v968_v23  ;;  %v571_v48 = vrot.slane %v962_v7, %v423_v25 }
  0xa8   : > { %v576_v4 = vsel %vm430_vm9, %v575_v44, %v571_v48 }
  0xa9   : > { %v964_v2 = vpop.xlane.xlu1 %550  ;;  %v966_v8 = vpop.xlane.xlu0 %548 }
  0xaa   : > { %v584_v49 = vrot.slane %v964_v2, %v968_v23  ;;  %v580_v50 = vrot.slane %v966_v8, %v423_v25 }
  0xac   : > { %v585_v5 = vsel %vm430_vm9, %v584_v49, %v580_v50 }
  0xad   : > { %v604_v14 = vsel %vm459_vm10, %v585_v5, %v576_v4 }
  0xb6   : > { %v400_v9 = vpop.xlane.xlu1 %399 }
  0xb7   : > { %v396_v10 = vpop.xlane.xlu0 %395  ;;  %v435_v29 = vrot.slane %v400_v9, %v423_v25 }
  0xb8   : > { %v424_v30 = vrot.slane %v396_v10, %v423_v25 }
  0xba   : > { %v402_v11 = vpop.xlane.xlu1 %401 }
  0xbb   : > { %v398_v12 = vpop.xlane.xlu0 %397  ;;  %v439_v26 = vrot.slane %v402_v11, %v968_v23 }
  0xbc   : > { %v429_v27 = vrot.slane %v398_v12, %v968_v23 }
  0xbd   : > { %v440_v34 = vsel %vm430_vm9, %v439_v26, %v435_v29 }
  0xbe   : > { %v477_v13 = vpop.xlane.xlu1 %476  ;;  %v431_v35 = vsel %vm430_vm9, %v429_v27, %v424_v30 }
  0xbf   : > { %v475_v15 = vpop.xlane.xlu0 %474  ;;  %v505_v45 = vrot.slane %v477_v13, %v968_v23  ;;  %v460_v51 = vsel %vm459_vm10, %v440_v34, %v431_v35 }
  0xc0   : > { %v501_v46 = vrot.slane %v475_v15, %v423_v25 }
  0xc2   : > { %v481_v16 = vpop.xlane.xlu1 %480  ;;  %v506_v62 = vsel %vm430_vm9, %v505_v45, %v501_v46 }
  0xc3   : > { %v479_v6 = vpop.xlane.xlu0 %478  ;;  %v514_v36 = vrot.slane %v481_v16, %v968_v23 }
  0xc4   : > { %v510_v37 = vrot.slane %v479_v6, %v423_v25 }
  0xc6   : > { %v406_v18 = vpop.xlane.xlu1 %405  ;;  %v515_v52 = vsel %vm430_vm9, %v514_v36, %v510_v37 }
  0xc7   : > { %v404_v21 = vpop.xlane.xlu0 %403  ;;  %v448_v31 = vrot.slane %v406_v18, %v968_v23  ;;  %v534_v3 = vsel %vm459_vm10, %v515_v52, %v506_v62  ;;  %v394_v18 = vld [vmem:[%s1039_s2] sm:$0xf] }
  0xc8   : > { %v444_v32 = vrot.slane %v404_v21, %v423_v25  ;;  %v473_v21 = vld [vmem:[%s1040_s3] sm:$0xf] }
  0xca   : > { %v485_v22 = vpop.xlane.xlu1 %484  ;;  %v449_v41 = vsel %vm430_vm9, %v448_v31, %v444_v32 }
  0xcb   : > { %v483_v24 = vpop.xlane.xlu0 %482  ;;  %v523_v38 = vrot.slane %v485_v22, %v968_v23  ;;  %v462_v56 = vsel %vm461_vm11, %v449_v41, %v460_v51 }
  0xcc   : > { %v519_v39 = vrot.slane %v483_v24, %v423_v25  ;;  %v543_v24 = vld [vmem:[%s1041_s4] sm:$0xf] }
  0xce   : > { %v555_v28 = vpop.xlane.xlu1 %554  ;;  %v524_v53 = vsel %vm430_vm9, %v523_v38, %v519_v39 }
  0xcf   : > { %v553_v33 = vpop.xlane.xlu0 %552  ;;  %v593_v57 = vrot.slane %v555_v28, %v968_v23  ;;  %v535_v2 = vsel %vm461_vm11, %v524_v53, %v534_v3 }
  0xd0   : > { %v589_v58 = vrot.slane %v553_v33, %v423_v25 }
  0xd2   : > { %v410_v40 = vpop.xlane.xlu1 %409  ;;  %v594_v8 = vsel %vm430_vm9, %v593_v57, %v589_v58 }
  0xd3   : > { %v457_v42 = vrot.slane %v410_v40, %v968_v23  ;;  %v408_v43 = vpop.xlane.xlu0 %407  ;;  %v605_v16 = vsel %vm461_vm11, %v594_v8, %v604_v14 }
  0xd4   : > { %v453_v47 = vrot.slane %v408_v43, %v423_v25 }
  0xd6   : > { %v489_v54 = vpop.xlane.xlu1 %488  ;;  %v458_v55 = vsel %vm430_vm9, %v457_v42, %v453_v47 }
  0xd7   : > { %v532_v59 = vrot.slane %v489_v54, %v968_v23  ;;  %v487_v60 = vpop.xlane.xlu0 %486  ;;  %v464_v61 = vsel %vm463_vm12, %v458_v55, %v462_v56 }
  0xd8   : > { %v528_v63 = vrot.slane %v487_v60, %v423_v25  ;;  %v467_v0 = vsel %vm466_vm13, %v464_v61, 0.0 }
  0xd9   : > { %468 = vadd.xlane.f32.xlu0 %v467_v0 }
  0xda   : > { %v559_v1 = vpop.xlane.xlu1 %558  ;;  %v533_v7 = vsel %vm430_vm9, %v532_v59, %v528_v63 }
  0xdb   : > { %v602_v9 = vrot.slane %v559_v1, %v968_v23  ;;  %v557_v10 = vpop.xlane.xlu0 %556  ;;  %v536_v11 = vsel %vm463_vm12, %v533_v7, %v535_v2 }
  0xdc   : > { %v598_v12 = vrot.slane %v557_v10, %v423_v25  ;;  %v538_v13 = vsel %vm466_vm13, %v536_v11, 0.0 }
  0xdd   : > { %539 = vadd.xlane.f32.xlu1 %v538_v13 }
  0xde   : > { %v603_v15 = vsel %vm430_vm9, %v602_v9, %v598_v12 }
  0xdf   : > { %v606_v17 = vsel %vm463_vm12, %v603_v15, %v605_v16 }
  0xe0   : > { %v608_v6 = vsel %vm466_vm13, %v606_v17, 0.0 }
  0xe1   : > { %609 = vadd.xlane.f32.xlu0 %v608_v6 }
 0x166   : > { %v469_v19 = vpop.xlane.xlu0 %468 }
 0x167   : > { %v470_v20 = vadd.f32 %v469_v19, %v394_v18 }
 0x169   : > { %472 = vst.msk [vmem:[%s1039_s2] sm:$0xf] %vm471_vm14, %v470_v20 }
 0x16a   : > { %v540_v22 = vpop.xlane.xlu1 %539 }
 0x16b   : > { %v541_v23 = vadd.f32 %v540_v22, %v473_v21 }
 0x16d   : > { %542 = vst.msk [vmem:[%s1040_s3] sm:$0xf] %vm471_vm14, %v541_v23 }
 0x16e   : > { %v610_v25 = vpop.xlane.xlu0 %609 }
 0x16f   : > { %v611_v26 = vadd.f32 %v610_v25, %v543_v24 }
 0x171   : > { %612 = vst.msk [vmem:[%s1041_s4] sm:$0xf] %vm471_vm14, %v611_v26 }
 0x172 PF: > { %s15_s17 = sadd.s32 1, %s844_s17   ;;  %s1042_s15 = smov %s840_s16 }
 0x173   : > { %p12_p6 = scmp.ge.s32.totalorder %s15_s17, 4   ;;  %s1043_s16 = smov %s1045_s18 }
 0x175   :  { %14 = sbr.rel (!%p12_p6) target bundleno = 2 (0x2), region = 89 }

</bundles_post_ra>
